<compile_context>
chip_gen: v7x
topology: tpu7x:2x2x1
jax: 0.10.0
libtpu: 0.0.40
codegen_flags: <defaults>
</compile_context>

<pallas_src>
import jax
import jax.numpy as jnp
from jax import lax
from jax.experimental import pallas as pl
from jax.experimental.pallas import tpu as pltpu


# ---------------------------------------------------------------------------
# Geometry / parameter preparation
# ---------------------------------------------------------------------------
def _pyramid_geometry(L, scale_rates):
    """Per-level output lengths and concat offsets (static)."""
    t_outs = []
    l = L
    for s in scale_rates:
        t = (l - s) // s + 1
        t_outs.append(t)
        l = t
    offsets = [0]
    for t in t_outs[:-1]:
        offsets.append(offsets[-1] + t)
    return tuple(t_outs), tuple(offsets)


def _fold_bn_and_fuse_taps(conv_weights, bn_params, scale_rates, C, Cp,
                           compute_dtype, eps):
    """Fold inference BatchNorm into the conv weights and fuse the s taps.

    Per level returns:
      Wf : (s*Cp, Cp) compute_dtype. Row index = k*Cp + c_in (matches the fused
           activation lane layout: tap-major, channel-minor); col = c_out.
           Padded rows/cols are zero.
      bf : (1, Cp) float32, folded shift beta - mean*scale (pad lanes zero).
    """
    fused_ws, fused_bs = [], []
    for W, (gamma, beta, mean, var), s in zip(conv_weights, bn_params, scale_rates):
        scale = gamma / jnp.sqrt(var + eps)                        # (C,)
        shift = beta - mean * scale                                # (C,)
        Wk = jnp.transpose(W * scale[:, None, None], (2, 1, 0))    # (s, C_in, C_out)
        Wk = jnp.pad(Wk, ((0, 0), (0, Cp - C), (0, Cp - C)))       # (s, Cp, Cp)
        fused_ws.append(Wk.reshape(s * Cp, Cp).astype(compute_dtype))
        fused_bs.append(jnp.pad(shift, (0, Cp - C)).reshape(1, Cp)
                        .astype(jnp.float32))
    return fused_ws, fused_bs


# ---------------------------------------------------------------------------
# Kernel
# ---------------------------------------------------------------------------
def _make_fpn_kernel(t_outs, offsets, strides, Cp, compute_dtype):
    """Fused pyramid kernel for a fixed (static) geometry.

    Args per grid step:
      x_ref     : (Bt, T1, s1*Cp)  level-1 input with taps pre-fused on lanes
      w_i, b_i  : (s_i*Cp, Cp) / (1, Cp)   folded weights / shifts (4 levels)
      o_ref     : (Bt, T_total, Cp) concatenated pyramid (channels-last, padded)
      stage_ref : (Bt, T1, Cp) f32  staging scratch for inter-level windows
    """
    n = len(strides)

    def kernel(x_ref, *args):
        w_refs = args[0:2 * n:2]
        b_refs = args[1:2 * n:2]
        o_ref = args[2 * n]
        stage_ref = args[2 * n + 1]
        Bt = x_ref.shape[0]

        # ---- level 1: taps already fused in the wrapper (free HBM reshape) ----
        t = t_outs[0]
        lhs = x_ref[...].reshape(Bt * t, strides[0] * Cp)
        acc = jnp.dot(lhs, w_refs[0][...], preferred_element_type=jnp.float32)
        acc = acc + b_refs[0][...]
        acc3 = acc.reshape(Bt, t, Cp)
        o_ref[:, offsets[0]:offsets[0] + t, :] = acc3.astype(o_ref.dtype)

        prev, prev_t = acc3, t

        # ---- levels 2..n: one K = s*Cp matmul each ----
        for i in range(1, n):
            s, t = strides[i], t_outs[i]
            if s == 1:
                lhs3 = prev                                     # (Bt, t, Cp)
            else:
                # Stage the previous level (f32, offset 0 => 8-sublane aligned),
                # then lane-concatenate the s strided taps so the whole level is
                # a single MXU contraction (tap-major / channel-minor lanes).
                stage_ref[:, 0:prev_t, :] = prev
                taps = [stage_ref[:, pl.ds(k, t, stride=s), :] for k in range(s)]
                lhs3 = jnp.concatenate(taps, axis=-1)           # (Bt, t, s*Cp)
            lhs = lhs3.astype(compute_dtype).reshape(Bt * t, s * Cp)
            acc = jnp.dot(lhs, w_refs[i][...], preferred_element_type=jnp.float32)
            acc = acc + b_refs[i][...]
            acc3 = acc.reshape(Bt, t, Cp)
            o_ref[:, offsets[i]:offsets[i] + t, :] = acc3.astype(o_ref.dtype)
            prev, prev_t = acc3, t

    return kernel


# ---------------------------------------------------------------------------
# Wrappers
# ---------------------------------------------------------------------------
def fpn_tiny_forward_channels_last(x_nlc, conv_weights, bn_params, scale_rates,
                                   *, eps=1e-5, compute_dtype=jnp.bfloat16):
    """Channels-last FPN_Tiny forward: x [B, L, C] -> [B, T_total, C]."""
    B, L, C = x_nlc.shape
    t_outs, offsets = _pyramid_geometry(L, scale_rates)
    T_total = sum(t_outs)
    s1, T1 = scale_rates[0], t_outs[0]
    Cp = ((C + 127) // 128) * 128          # lane-dense channel count
    out_dtype = x_nlc.dtype

    fused_ws, fused_bs = _fold_bn_and_fuse_taps(
        conv_weights, bn_params, scale_rates, C, Cp, compute_dtype, eps)

    # Channel pad + cast, trim the (rare) conv remainder, and fuse the level-1
    # taps with a free contiguous HBM reshape [B, T1*s1, Cp] -> [B, T1, s1*Cp].
    x_p = jnp.pad(x_nlc, ((0, 0), (0, 0), (0, Cp - C))).astype(compute_dtype)
    x_f = x_p[:, :T1 * s1, :].reshape(B, T1, s1 * Cp)

    # Batch tile: fold Bt elements into the matmul M dim; keep grid >= 2 so both
    # v7x TensorCores get work; budget double-buffered blocks against VMEM.
    in_bytes = T1 * s1 * Cp * x_f.dtype.itemsize
    out_bytes = T_total * Cp * jnp.dtype(out_dtype).itemsize
    stage_bytes = T1 * Cp * 4
    per_elem = 2 * in_bytes + 2 * out_bytes + stage_bytes
    budget = 20 * 1024 * 1024
    Bt = 1
    for cand in range(1, B + 1):
        if B % cand != 0:
            continue
        if B >= 2 and B // cand < 2:
            break
        if cand * per_elem > budget:
            break
        Bt = cand

    weight_bytes = (sum(w.size * w.dtype.itemsize for w in fused_ws)
                    + sum(b.size * b.dtype.itemsize for b in fused_bs))
    vmem_limit = int(min(max(4 * (Bt * per_elem + weight_bytes), 16 << 20),
                         48 << 20))

    kernel = _make_fpn_kernel(t_outs, offsets, tuple(scale_rates), Cp,
                              compute_dtype)

    in_specs = [pl.BlockSpec((Bt, T1, s1 * Cp), lambda b: (b, 0, 0))]
    args = [x_f]
    for i, s in enumerate(scale_rates):
        # Constant-index blocks: Pallas DMAs them once (the block index never
        # changes between grid steps), so buffering cost here is negligible.
        in_specs.append(pl.BlockSpec((s * Cp, Cp), lambda b: (0, 0)))
        in_specs.append(pl.BlockSpec((1, Cp), lambda b: (0, 0)))
        args.append(fused_ws[i])
        args.append(fused_bs[i])

    flops = (2 * B * sum(t * (s * Cp) * Cp for t, s in zip(t_outs, scale_rates))
             + B * T_total * Cp)
    bytes_accessed = (x_f.size * x_f.dtype.itemsize
                      + B * T_total * Cp * jnp.dtype(out_dtype).itemsize
                      + weight_bytes)

    out_p = pl.pallas_call(
        kernel,
        out_shape=jax.ShapeDtypeStruct((B, T_total, Cp), out_dtype),
        grid_spec=pltpu.PrefetchScalarGridSpec(
            num_scalar_prefetch=0,
            grid=(B // Bt,),
            in_specs=in_specs,
            out_specs=pl.BlockSpec((Bt, T_total, Cp), lambda b: (b, 0, 0)),
            scratch_shapes=[pltpu.VMEM((Bt, T1, Cp), jnp.float32)],
        ),
        compiler_params=pltpu.CompilerParams(
            dimension_semantics=("parallel",),
            vmem_limit_bytes=vmem_limit,
        ),
        cost_estimate=pl.CostEstimate(flops=flops, transcendentals=0,
                                      bytes_accessed=bytes_accessed),
    )(*args)

    return out_p[:, :, :C]


def fpn_tiny_forward(x, conv_weights, bn_params, scale_rates, *, eps=1e-5,
                     compute_dtype=jnp.bfloat16):
    """PyTorch-layout FPN_Tiny forward: x [B, C, L] -> [B, C, T_total].

    NOTE(perf): the two transposes below are full HBM read+write passes done by
    XLA around the (bandwidth-bound) kernel; in a channels-last pipeline call
    fpn_tiny_forward_channels_last directly and they disappear.
    """
    x_nlc = jnp.transpose(x, (0, 2, 1))
    out_nlc = fpn_tiny_forward_channels_last(
        x_nlc, conv_weights, bn_params, scale_rates,
        eps=eps, compute_dtype=compute_dtype)
    return jnp.transpose(out_nlc, (0, 2, 1))


# ---------------------------------------------------------------------------
# References for the self-test
# ---------------------------------------------------------------------------
def _matched_reference(x_f, fused_ws, fused_bs, t_outs, strides, Cp, out_dtype):
    """Pure-JAX mirror of the kernel's math (bf16 operands, f32 accumulation)."""
    B = x_f.shape[0]
    outs = []
    prev = None
    for i in range(len(strides)):
        s, t = strides[i], t_outs[i]
        if i == 0:
            lhs = x_f.reshape(B * t, s * Cp)
        else:
            if s == 1:
                lhs3 = prev
            else:
                taps = [prev[:, k:k + s * t:s, :] for k in range(s)]
                lhs3 = jnp.concatenate(taps, axis=-1)
            lhs = lhs3.astype(fused_ws[i].dtype).reshape(B * t, s * Cp)
        acc = jnp.dot(lhs, fused_ws[i],
                      preferred_element_type=jnp.float32) + fused_bs[i]
        acc3 = acc.reshape(B, t, Cp)
        outs.append(acc3.astype(out_dtype))
        prev = acc3
    return jnp.concatenate(outs, axis=1)


def _spec_reference(x, conv_weights, bn_params, scale_rates, eps=1e-5):
    """Float32 spec: Conv1d(k=s, stride=s, no bias) + inference BN, cat dim=2."""
    outs = []
    h = x
    for W, (gamma, beta, mean, var), s in zip(conv_weights, bn_params, scale_rates):
        h = lax.conv_general_dilated(
            h, W, window_strides=(s,), padding='VALID',
            dimension_numbers=('NCH', 'OIH', 'NCH'),
            precision=lax.Precision.HIGHEST)
        scale = gamma / jnp.sqrt(var + eps)
        shift = beta - mean * scale
        h = h * scale[None, :, None] + shift[None, :, None]
        outs.append(h)
    return jnp.concatenate(outs, axis=2)


# ---------------------------------------------------------------------------
# Self-test
# ---------------------------------------------------------------------------
if __name__ == "__main__":
    key = jax.random.PRNGKey(0)
    B, C, L = 4, 32, 64
    scale_rates = (2, 2, 2, 1)          # FPN_Tiny default scale_rate_list

    keys = jax.random.split(key, 1 + 5 * len(scale_rates))
    x = jax.random.normal(keys[0], (B, C, L), dtype=jnp.float32)

    conv_weights, bn_params = [], []
    ki = 1
    for s in scale_rates:
        W = jax.random.normal(keys[ki], (C, C, s), jnp.float32) / jnp.sqrt(C * s)
        ki += 1
        gamma = 1.0 + 0.1 * jax.random.normal(keys[ki], (C,), jnp.float32); ki += 1
        beta = 0.1 * jax.random.normal(keys[ki], (C,), jnp.float32); ki += 1
        mean = 0.1 * jax.random.normal(keys[ki], (C,), jnp.float32); ki += 1
        var = jnp.abs(jax.random.normal(keys[ki], (C,), jnp.float32)) + 0.5; ki += 1
        conv_weights.append(W)
        bn_params.append((gamma, beta, mean, var))

    out = fpn_tiny_forward(x, conv_weights, bn_params, scale_rates)
    out = jax.block_until_ready(out)

    t_outs, _ = _pyramid_geometry(L, scale_rates)
    assert out.shape == (B, C, sum(t_outs)), out.shape

    # (1) Matched-numerics check: same bf16 operands / f32 accumulation as the
    #     kernel, so only accumulation order differs -> tight tolerance.
    Cp = ((C + 127) // 128) * 128
    fused_ws, fused_bs = _fold_bn_and_fuse_taps(
        conv_weights, bn_params, scale_rates, C, Cp, jnp.bfloat16, 1e-5)
    x_nlc = jnp.transpose(x, (0, 2, 1))
    x_p = jnp.pad(x_nlc, ((0, 0), (0, 0), (0, Cp - C))).astype(jnp.bfloat16)
    x_f = x_p[:, :t_outs[0] * scale_rates[0], :].reshape(
        B, t_outs[0], scale_rates[0] * Cp)
    matched = _matched_reference(x_f, fused_ws, fused_bs, t_outs, scale_rates,
                                 Cp, x.dtype)
    matched_ncl = jnp.transpose(matched[:, :, :C], (0, 2, 1))
    assert jnp.allclose(out, matched_ncl, atol=5e-3, rtol=5e-3), \
        float(jnp.max(jnp.abs(out - matched_ncl)))

    # (2) Spec check vs the float32 HIGHEST-precision Conv1d+BN reference.  The
    #     kernel runs single-pass bf16 MXU math (per the perf review), so use a
    #     relative-L2 criterion instead of the old 1e-4 element tolerance.
    spec = _spec_reference(x, conv_weights, bn_params, scale_rates)
    rel_l2 = float(jnp.linalg.norm(out - spec) / jnp.linalg.norm(spec))
    assert rel_l2 < 5e-2, rel_l2

    print("KERNEL_OK")
</pallas_src>

<mosaic_0001>
module attributes {stable_mosaic.version = 11 : i64} {
  func.func @kernel(%arg0: i32, %arg1: memref<2x32x256xbf16, #tpu.memory_space<vmem>>, %arg2: memref<256x128xbf16, #tpu.memory_space<vmem>>, %arg3: memref<1x128xf32, #tpu.memory_space<vmem>>, %arg4: memref<256x128xbf16, #tpu.memory_space<vmem>>, %arg5: memref<1x128xf32, #tpu.memory_space<vmem>>, %arg6: memref<256x128xbf16, #tpu.memory_space<vmem>>, %arg7: memref<1x128xf32, #tpu.memory_space<vmem>>, %arg8: memref<128x128xbf16, #tpu.memory_space<vmem>>, %arg9: memref<1x128xf32, #tpu.memory_space<vmem>>, %arg10: memref<2x64x128xf32, #tpu.memory_space<vmem>>, %arg11: memref<2x32x128xf32, #tpu.memory_space<vmem>>) attributes {dimension_semantics = [#tpu.dimension_semantics<parallel>], iteration_bounds = array<i64: 2>, scalar_prefetch = 0 : i64, scratch_operands = 1 : i64, tpu.core_type = #tpu.core_type<tc>, window_params = [{transform_indices = @transform_0, window_bounds = array<i64: 2, 32, 256>}, {pipeline_mode = #tpu.pipeline_mode<synchronous>, transform_indices = @transform_1, window_bounds = array<i64: 256, 128>}, {pipeline_mode = #tpu.pipeline_mode<synchronous>, transform_indices = @transform_2, window_bounds = array<i64: 1, 128>}, {pipeline_mode = #tpu.pipeline_mode<synchronous>, transform_indices = @transform_3, window_bounds = array<i64: 256, 128>}, {pipeline_mode = #tpu.pipeline_mode<synchronous>, transform_indices = @transform_4, window_bounds = array<i64: 1, 128>}, {pipeline_mode = #tpu.pipeline_mode<synchronous>, transform_indices = @transform_5, window_bounds = array<i64: 256, 128>}, {pipeline_mode = #tpu.pipeline_mode<synchronous>, transform_indices = @transform_6, window_bounds = array<i64: 1, 128>}, {pipeline_mode = #tpu.pipeline_mode<synchronous>, transform_indices = @transform_7, window_bounds = array<i64: 128, 128>}, {pipeline_mode = #tpu.pipeline_mode<synchronous>, transform_indices = @transform_8, window_bounds = array<i64: 1, 128>}, {transform_indices = @transform_9, window_bounds = array<i64: 2, 64, 128>}]} {
    %c0 = arith.constant 0 : index
    %c0_0 = arith.constant 0 : index
    %c0_1 = arith.constant 0 : index
    %0 = vector.load %arg1[%c0, %c0_0, %c0_1] : memref<2x32x256xbf16, #tpu.memory_space<vmem>>, vector<2x32x256xbf16>
    %1 = vector.shape_cast %0 : vector<2x32x256xbf16> to vector<64x256xbf16>
    %c0_2 = arith.constant 0 : index
    %c0_3 = arith.constant 0 : index
    %2 = vector.load %arg2[%c0_2, %c0_3] : memref<256x128xbf16, #tpu.memory_space<vmem>>, vector<256x128xbf16>
    %cst = arith.constant dense<0.000000e+00> : vector<64x128xf32>
    %3 = tpu.matmul %1, %2, %cst {dimension_numbers = #tpu.dot_dimension_numbers<[1], [0], [0], [1], [0, 0, 1, 1], [], []>} : vector<64x256xbf16>, vector<256x128xbf16>, vector<64x128xf32> -> vector<64x128xf32>
    %c0_4 = arith.constant 0 : index
    %c0_5 = arith.constant 0 : index
    %4 = vector.load %arg3[%c0_4, %c0_5] : memref<1x128xf32, #tpu.memory_space<vmem>>, vector<1x128xf32>
    %5 = vector.broadcast %4 : vector<1x128xf32> to vector<64x128xf32>
    %6 = arith.addf %3, %5 : vector<64x128xf32>
    %7 = vector.shape_cast %6 : vector<64x128xf32> to vector<2x32x128xf32>
    %c0_6 = arith.constant 0 : index
    %c0_7 = arith.constant 0 : index
    %c0_8 = arith.constant 0 : index
    %8 = vector.load %arg10[%c0_6, %c0_7, %c0_8] : memref<2x64x128xf32, #tpu.memory_space<vmem>>, vector<2x32x128xf32>
    tpu.vector_store %arg10[%c0_6, %c0_7, %c0_8], %7 {strides = array<i32>} : memref<2x64x128xf32, #tpu.memory_space<vmem>>, vector<2x32x128xf32>,
    %c0_9 = arith.constant 0 : index
    %c0_10 = arith.constant 0 : index
    %c0_11 = arith.constant 0 : index
    %9 = vector.load %arg11[%c0_9, %c0_10, %c0_11] : memref<2x32x128xf32, #tpu.memory_space<vmem>>, vector<2x32x128xf32>
    tpu.vector_store %arg11[%c0_9, %c0_10, %c0_11], %7 {strides = array<i32>} : memref<2x32x128xf32, #tpu.memory_space<vmem>>, vector<2x32x128xf32>,
    %c0_12 = arith.constant 0 : index
    %c0_13 = arith.constant 0 : index
    %c0_14 = arith.constant 0 : index
    %10 = tpu.strided_load %arg11[%c0_12, %c0_13, %c0_14] {strides = array<i32: 1, 2, 1>} : memref<2x32x128xf32, #tpu.memory_space<vmem>>, vector<2x16x128xf32>
    %c0_15 = arith.constant 0 : index
    %c1 = arith.constant 1 : index
    %c0_16 = arith.constant 0 : index
    %11 = tpu.strided_load %arg11[%c0_15, %c1, %c0_16] {strides = array<i32: 1, 2, 1>} : memref<2x32x128xf32, #tpu.memory_space<vmem>>, vector<2x16x128xf32>
    %12 = tpu.concatenate %10, %11 in 2 : vector<2x16x128xf32>, vector<2x16x128xf32> -> vector<2x16x256xf32>
    %13 = arith.truncf %12 : vector<2x16x256xf32> to vector<2x16x256xbf16>
    %14 = vector.shape_cast %13 : vector<2x16x256xbf16> to vector<32x256xbf16>
    %c0_17 = arith.constant 0 : index
    %c0_18 = arith.constant 0 : index
    %15 = vector.load %arg4[%c0_17, %c0_18] : memref<256x128xbf16, #tpu.memory_space<vmem>>, vector<256x128xbf16>
    %cst_19 = arith.constant dense<0.000000e+00> : vector<32x128xf32>
    %16 = tpu.matmul %14, %15, %cst_19 {dimension_numbers = #tpu.dot_dimension_numbers<[1], [0], [0], [1], [0, 0, 1, 1], [], []>} : vector<32x256xbf16>, vector<256x128xbf16>, vector<32x128xf32> -> vector<32x128xf32>
    %c0_20 = arith.constant 0 : index
    %c0_21 = arith.constant 0 : index
    %17 = vector.load %arg5[%c0_20, %c0_21] : memref<1x128xf32, #tpu.memory_space<vmem>>, vector<1x128xf32>
    %18 = vector.broadcast %17 : vector<1x128xf32> to vector<32x128xf32>
    %19 = arith.addf %16, %18 : vector<32x128xf32>
    %20 = vector.shape_cast %19 : vector<32x128xf32> to vector<2x16x128xf32>
    %c0_22 = arith.constant 0 : index
    %c32 = arith.constant 32 : index
    %c0_23 = arith.constant 0 : index
    %21 = vector.load %arg10[%c0_22, %c32, %c0_23] : memref<2x64x128xf32, #tpu.memory_space<vmem>>, vector<2x16x128xf32>
    tpu.vector_store %arg10[%c0_22, %c32, %c0_23], %20 {strides = array<i32>} : memref<2x64x128xf32, #tpu.memory_space<vmem>>, vector<2x16x128xf32>,
    %c0_24 = arith.constant 0 : index
    %c0_25 = arith.constant 0 : index
    %c0_26 = arith.constant 0 : index
    %22 = vector.load %arg11[%c0_24, %c0_25, %c0_26] : memref<2x32x128xf32, #tpu.memory_space<vmem>>, vector<2x16x128xf32>
    tpu.vector_store %arg11[%c0_24, %c0_25, %c0_26], %20 {strides = array<i32>} : memref<2x32x128xf32, #tpu.memory_space<vmem>>, vector<2x16x128xf32>,
    %c0_27 = arith.constant 0 : index
    %c0_28 = arith.constant 0 : index
    %c0_29 = arith.constant 0 : index
    %23 = tpu.strided_load %arg11[%c0_27, %c0_28, %c0_29] {strides = array<i32: 1, 2, 1>} : memref<2x32x128xf32, #tpu.memory_space<vmem>>, vector<2x8x128xf32>
    %c0_30 = arith.constant 0 : index
    %c1_31 = arith.constant 1 : index
    %c0_32 = arith.constant 0 : index
    %24 = tpu.strided_load %arg11[%c0_30, %c1_31, %c0_32] {strides = array<i32: 1, 2, 1>} : memref<2x32x128xf32, #tpu.memory_space<vmem>>, vector<2x8x128xf32>
    %25 = tpu.concatenate %23, %24 in 2 : vector<2x8x128xf32>, vector<2x8x128xf32> -> vector<2x8x256xf32>
    %26 = arith.truncf %25 : vector<2x8x256xf32> to vector<2x8x256xbf16>
    %27 = vector.shape_cast %26 : vector<2x8x256xbf16> to vector<16x256xbf16>
    %c0_33 = arith.constant 0 : index
    %c0_34 = arith.constant 0 : index
    %28 = vector.load %arg6[%c0_33, %c0_34] : memref<256x128xbf16, #tpu.memory_space<vmem>>, vector<256x128xbf16>
    %cst_35 = arith.constant dense<0.000000e+00> : vector<16x128xf32>
    %29 = tpu.matmul %27, %28, %cst_35 {dimension_numbers = #tpu.dot_dimension_numbers<[1], [0], [0], [1], [0, 0, 1, 1], [], []>} : vector<16x256xbf16>, vector<256x128xbf16>, vector<16x128xf32> -> vector<16x128xf32>
    %c0_36 = arith.constant 0 : index
    %c0_37 = arith.constant 0 : index
    %30 = vector.load %arg7[%c0_36, %c0_37] : memref<1x128xf32, #tpu.memory_space<vmem>>, vector<1x128xf32>
    %31 = vector.broadcast %30 : vector<1x128xf32> to vector<16x128xf32>
    %32 = arith.addf %29, %31 : vector<16x128xf32>
    %33 = vector.shape_cast %32 : vector<16x128xf32> to vector<2x8x128xf32>
    %c0_38 = arith.constant 0 : index
    %c48 = arith.constant 48 : index
    %c0_39 = arith.constant 0 : index
    %34 = vector.load %arg10[%c0_38, %c48, %c0_39] : memref<2x64x128xf32, #tpu.memory_space<vmem>>, vector<2x8x128xf32>
    tpu.vector_store %arg10[%c0_38, %c48, %c0_39], %33 {strides = array<i32>} : memref<2x64x128xf32, #tpu.memory_space<vmem>>, vector<2x8x128xf32>,
    %35 = arith.truncf %33 : vector<2x8x128xf32> to vector<2x8x128xbf16>
    %36 = vector.shape_cast %35 : vector<2x8x128xbf16> to vector<16x128xbf16>
    %c0_40 = arith.constant 0 : index
    %c0_41 = arith.constant 0 : index
    %37 = vector.load %arg8[%c0_40, %c0_41] : memref<128x128xbf16, #tpu.memory_space<vmem>>, vector<128x128xbf16>
    %cst_42 = arith.constant dense<0.000000e+00> : vector<16x128xf32>
    %38 = tpu.matmul %36, %37, %cst_42 {dimension_numbers = #tpu.dot_dimension_numbers<[1], [0], [0], [1], [0, 0, 1, 1], [], []>} : vector<16x128xbf16>, vector<128x128xbf16>, vector<16x128xf32> -> vector<16x128xf32>
    %c0_43 = arith.constant 0 : index
    %c0_44 = arith.constant 0 : index
    %39 = vector.load %arg9[%c0_43, %c0_44] : memref<1x128xf32, #tpu.memory_space<vmem>>, vector<1x128xf32>
    %40 = vector.broadcast %39 : vector<1x128xf32> to vector<16x128xf32>
    %41 = arith.addf %38, %40 : vector<16x128xf32>
    %42 = vector.shape_cast %41 : vector<16x128xf32> to vector<2x8x128xf32>
    %c0_45 = arith.constant 0 : index
    %c56 = arith.constant 56 : index
    %c0_46 = arith.constant 0 : index
    %43 = vector.load %arg10[%c0_45, %c56, %c0_46] : memref<2x64x128xf32, #tpu.memory_space<vmem>>, vector<2x8x128xf32>
    tpu.vector_store %arg10[%c0_45, %c56, %c0_46], %42 {strides = array<i32>} : memref<2x64x128xf32, #tpu.memory_space<vmem>>, vector<2x8x128xf32>,
    return
  }
  func.func @transform_0(%arg0: i32) -> (i32, i32, i32) {
    %c0_i32 = arith.constant 0 : i32
    %c0_i32_0 = arith.constant 0 : i32
    %c0_i32_1 = arith.constant 0 : i32
    return %arg0, %c0_i32, %c0_i32_0 : i32, i32, i32
  }
  func.func @transform_1(%arg0: i32) -> (i32, i32) {
    %c0_i32 = arith.constant 0 : i32
    %c0_i32_0 = arith.constant 0 : i32
    %c0_i32_1 = arith.constant 0 : i32
    return %c0_i32, %c0_i32_0 : i32, i32
  }
  func.func @transform_2(%arg0: i32) -> (i32, i32) {
    %c0_i32 = arith.constant 0 : i32
    %c0_i32_0 = arith.constant 0 : i32
    %c0_i32_1 = arith.constant 0 : i32
    return %c0_i32, %c0_i32_0 : i32, i32
  }
  func.func @transform_3(%arg0: i32) -> (i32, i32) {
    %c0_i32 = arith.constant 0 : i32
    %c0_i32_0 = arith.constant 0 : i32
    %c0_i32_1 = arith.constant 0 : i32
    return %c0_i32, %c0_i32_0 : i32, i32
  }
  func.func @transform_4(%arg0: i32) -> (i32, i32) {
    %c0_i32 = arith.constant 0 : i32
    %c0_i32_0 = arith.constant 0 : i32
    %c0_i32_1 = arith.constant 0 : i32
    return %c0_i32, %c0_i32_0 : i32, i32
  }
  func.func @transform_5(%arg0: i32) -> (i32, i32) {
    %c0_i32 = arith.constant 0 : i32
    %c0_i32_0 = arith.constant 0 : i32
    %c0_i32_1 = arith.constant 0 : i32
    return %c0_i32, %c0_i32_0 : i32, i32
  }
  func.func @transform_6(%arg0: i32) -> (i32, i32) {
    %c0_i32 = arith.constant 0 : i32
    %c0_i32_0 = arith.constant 0 : i32
    %c0_i32_1 = arith.constant 0 : i32
    return %c0_i32, %c0_i32_0 : i32, i32
  }
  func.func @transform_7(%arg0: i32) -> (i32, i32) {
    %c0_i32 = arith.constant 0 : i32
    %c0_i32_0 = arith.constant 0 : i32
    %c0_i32_1 = arith.constant 0 : i32
    return %c0_i32, %c0_i32_0 : i32, i32
  }
  func.func @transform_8(%arg0: i32) -> (i32, i32) {
    %c0_i32 = arith.constant 0 : i32
    %c0_i32_0 = arith.constant 0 : i32
    %c0_i32_1 = arith.constant 0 : i32
    return %c0_i32, %c0_i32_0 : i32, i32
  }
  func.func @transform_9(%arg0: i32) -> (i32, i32, i32) {
    %c0_i32 = arith.constant 0 : i32
    %c0_i32_0 = arith.constant 0 : i32
    %c0_i32_1 = arith.constant 0 : i32
    return %arg0, %c0_i32, %c0_i32_0 : i32, i32, i32
  }
}

</mosaic_0001>

<bundles_post_ra>
// kernel: tpu_custom_call.1
= control target key start
LH: loop header
LB: loop body
LE: loop exit
PB: predicated region body
PF: predicated region fallthrough
CT: control target
= control target key end

     0   :  { %s2332_s0 = inlined_call_operand.hbm [shape: bf16[4,32,256], index: 0, kind: input, shape index: {}]   ;;  %s2333_s1 = inlined_call_operand.hbm [shape: bf16[256,128], index: 1, kind: input, shape index: {}]   ;;  %s2334_s2 = inlined_call_operand.vmem [shape: f32[1,128], index: 2, kind: input, shape index: {}]   ;;  %s2335_s3 = inlined_call_operand.hbm [shape: bf16[256,128], index: 3, kind: input, shape index: {}]   ;;  %s2336_s4 = inlined_call_operand.vmem [shape: f32[1,128], index: 4, kind: input, shape index: {}]   ;;  %s2337_s5 = inlined_call_operand.hbm [shape: bf16[256,128], index: 5, kind: input, shape index: {}]   ;;  %s2338_s6 = inlined_call_operand.vmem [shape: f32[1,128], index: 6, kind: input, shape index: {}]   ;;  %s2339_s7 = inlined_call_operand.hbm [shape: bf16[128,128], index: 7, kind: input, shape index: {}]   ;;  %s2340_s8 = inlined_call_operand.vmem [shape: f32[1,128], index: 8, kind: input, shape index: {}]   ;;  %s2341_s9 = inlined_call_operand.hbm [shape: f32[4,64,128], index: 9, kind: output, shape index: {}]  }
   0x1   :  { %2348 = sst [smem:[#allocation19_spill]] %s2341_s9 }
   0x2   :  { %14 = vsyncpa [#allocation4], 0 }
   0x3   :  { %16 = vsyncpa [#allocation4 + $0x1], 0 }
   0x4   :  { %17 = vsyncpa [#allocation7], 0 }
   0x5   :  { %18 = vsyncpa [#allocation10], 0 }
   0x6   :  { %19 = vsyncpa [#allocation5], 0 }
   0x7   :  { %21 = vsyncpa [#allocation5 + $0x1], 0  ;;  %s2001_s30 = smov 0   ;;  %s2003_s10 = smov 0  }
   0x8   :  { %s2005_s11 = smov 0   ;;  %s2007_s12 = smov 0  }
   0x9 LB: > { %2349 = sst [smem:[#allocation17_spill]] %s1923_s30  ;;  %s2022_s13 = sadd.s32 4294967295, %s1935_s12   ;;  %s1935_s12 = sphi %s2007_s12, %s2373_s12   ;;  %s1931_s11 = sphi %s2005_s11, %s2372_s11   ;;  %s1927_s10 = sphi %s2003_s10, %s2371_s10   ;;  %s1923_s30 = sphi %s2001_s30, %s2370_s30  }
   0xa   : > { %s1335_s14 = sadd.s32 4294967294, %s1935_s12   ;;  %p47_p0 = scmp.ne.s32.totalorder %s1927_s10, %s1923_s30 }
   0xb   : > { %p2342_p1 = scmp.eq.s32.totalorder %s2022_s13, 0  ;;  %p245_p3 = scmp.eq.s32.totalorder %s1335_s14, 1 }
   0xc   : > { %p1336_p5 = scmp.ge.s32.totalorder %s1935_s12, 1  ;;  %p252_p7 = scmp.lt.s32.totalorder %s1935_s12, 3 }
   0xd   : > { %p2031_p4 = por %p2342_p1, %p47_p0  ;;  %p2036_p6 = por %p245_p3, %p47_p0 }
   0xe   : > { %p2041_p8 = pnand %p1336_p5, %p252_p7  ;;  %s1937_s18 = smov [#allocation6]  }
   0xf   : > { %s2350_s15 = scalar_select %p2031_p4, 1, 0 }
  0x10   : > { %s2351_s16 = scalar_select %p2036_p6, 1, 0 }
  0x11   : > { %s2353_s17 = scalar_select %p2041_p8, 1, 0 }
  0x12   : > { %2352 = sst [smem:[#allocation18_spill]] %s2351_s16  ;;  %s264_s19 = sshll.u32 %s1937_s18, 4  ;;  %s2045_s19 = int_to_ptr.vmem [resolvable:$true] %s264_s19 }
  0x13   : > { %p1576_p9 = pneg %p2041_p8  ;;  %s1938_s21 = smov [#allocation9]  }
  0x14   : > { %s296_s22 = sshll.u32 %s1938_s21, 4  ;;  %s1939_s23 = smov [#allocation8]   ;;  %s2056_s22 = int_to_ptr.vmem [resolvable:$true] %s296_s22 }
  0x15   : > { %p2052_p11 = pnand %p1576_p9, %p2342_p1  ;;  %s2058_s24 = sshll.u32 %s1939_s23, 4  ;;  %s281_s24 = int_to_ptr.vmem [resolvable:$true] %s2058_s24 }
  0x16   : > { %s1719_s27 = scalar_lea.hbm %s2333_s1, 2048 }
  0x17   : > { %p1720_p12 = scmp.ne.s32.totalorder %s2333_s1, %s1719_s27  ;;  %p2068_p13 = pneg %p2052_p11 }
  0x18   : > { %p1726_p5 = scmp.lt.u32.totalorder %s1719_s27, %s2333_s1 }
  0x19   : > { %p1722_p0 = pnand %p2068_p13, %p1720_p12 }
  0x1b   : > { %p1723_p3 = pneg %p1722_p0 }
  0x1d   : > { %p1728_p7 = pnand %p1726_p5, %p1723_p3 }
  0x1f   : > { %1731 = shalt.err (!%p1728_p7)
}
  0x20   : > { %s1732_s23 = scalar_lea.vmem %s2045_s19, 2048  ;;  %p1740_p2 = scmp.lt.s32.totalorder %s2045_s19, %s2045_s19 }
  0x21   : > { %p1733_p9 = scmp.ne.s32.totalorder %s2045_s19, %s1732_s23  ;;  %p1741_p6 = scmp.lt.s32.totalorder %s1732_s23, %s1732_s23 }
  0x23   : > { %p1735_p10 = pnand %p1733_p9, %p2068_p13  ;;  %p1742_p12 = por %p1741_p6, %p1740_p2 }
  0x25   : > { %p1736_p1 = pneg %p1735_p10 }
  0x27   : > { %p1743_p0 = pnand %p1742_p12, %p1736_p1 }
  0x29   : > { %1746 = shalt.err (!%p1743_p0)
}
  0x2a   : > { %s1940_s25 = smov 64   ;;  %s1941_s26 = smov 4  }
  0x2b   : > { %1579 = dma.hbm_to_vmem [thread:$0]  (!%p2052_p11), %s2333_s1, 2048, %s2045_s19, [#allocation7], %s1940_s25, %s1940_s25, %s1941_s26  }
  0x2c   : > { %s1747_s21 = scalar_lea.hbm %s2337_s5, 2048 }
  0x2d   : > { %p1748_p1 = scmp.ne.s32.totalorder %s2337_s5, %s1747_s21  ;;  %p1754_p10 = scmp.lt.u32.totalorder %s1747_s21, %s2337_s5 }
  0x2f   : > { %p1750_p2 = pnand %p1748_p1, %p2068_p13 }
  0x31   : > { %p1751_p6 = pneg %p1750_p2 }
  0x33   : > { %p1756_p3 = pnand %p1754_p10, %p1751_p6 }
  0x35   : > { %1759 = shalt.err (!%p1756_p3)
}
  0x36   : > { %s1760_s19 = scalar_lea.vmem %s2056_s22, 2048  ;;  %p1768_p12 = scmp.lt.s32.totalorder %s2056_s22, %s2056_s22 }
  0x37   : > { %p1761_p5 = scmp.ne.s32.totalorder %s2056_s22, %s1760_s19  ;;  %p1769_p0 = scmp.lt.s32.totalorder %s1760_s19, %s1760_s19 }
  0x39   : > { %p1763_p7 = pnand %p1761_p5, %p2068_p13  ;;  %p1770_p1 = por %p1769_p0, %p1768_p12 }
  0x3b   : > { %p1764_p9 = pneg %p1763_p7 }
  0x3d   : > { %p1771_p2 = pnand %p1770_p1, %p1764_p9 }
  0x3f   : > { %1774 = shalt.err (!%p1771_p2)
}
  0x40   : > { %1585 = dma.hbm_to_vmem [thread:$0]  (!%p2052_p11), %s2337_s5, 2048, %s2056_s22, [#allocation10], %s1940_s25, %s1940_s25, %s1941_s26  }
  0x41   : > { %s1775_s28 = scalar_lea.hbm %s2335_s3, 2048 }
  0x42   : > { %p1776_p6 = scmp.ne.s32.totalorder %s2335_s3, %s1775_s28  ;;  %p1782_p5 = scmp.lt.u32.totalorder %s1775_s28, %s2335_s3 }
  0x44   : > { %p1778_p10 = pnand %p1776_p6, %p2068_p13 }
  0x46   : > { %p1779_p3 = pneg %p1778_p10 }
  0x48   : > { %p1784_p7 = pnand %p1782_p5, %p1779_p3 }
  0x4a   : > { %1787 = shalt.err (!%p1784_p7)
}
  0x4b   : > { %s1788_s19 = scalar_lea.vmem %s281_s24, 2048  ;;  %p1796_p1 = scmp.lt.s32.totalorder %s281_s24, %s281_s24 }
  0x4c   : > { %p1789_p9 = scmp.ne.s32.totalorder %s281_s24, %s1788_s19  ;;  %p1797_p2 = scmp.lt.s32.totalorder %s1788_s19, %s1788_s19 }
  0x4e   : > { %p1791_p12 = pnand %p1789_p9, %p2068_p13  ;;  %p1798_p4 = por %p1797_p2, %p1796_p1 }
  0x50   : > { %p1792_p0 = pneg %p1791_p12 }
  0x52   : > { %p1799_p8 = pnand %p1798_p4, %p1792_p0 }
  0x54   : > { %1802 = shalt.err (!%p1799_p8)
}
  0x55   : > { %1582 = dma.hbm_to_vmem [thread:$0]  (!%p2052_p11), %s2335_s3, 2048, %s281_s24, [#allocation7], %s1940_s25, %s1940_s25, %s1941_s26  }
  0x56   : > { %s1942_s30 = smov [#allocation11]   ;;  %s1803_s29 = scalar_lea.hbm %s2339_s7, 1024 }
  0x57   : > { %s312_s16 = sshll.u32 %s1942_s30, 4  ;;  %p1804_p4 = scmp.ne.s32.totalorder %s2339_s7, %s1803_s29  ;;  %s313_s16 = int_to_ptr.vmem [resolvable:$true] %s312_s16 }
  0x58   : > { %p1810_p10 = scmp.lt.u32.totalorder %s1803_s29, %s2339_s7 }
  0x59   : > { %p1806_p8 = pnand %p1804_p4, %p2068_p13 }
  0x5b   : > { %p1807_p6 = pneg %p1806_p8 }
  0x5d   : > { %p1812_p3 = pnand %p1810_p10, %p1807_p6 }
  0x5f   : > { %1815 = shalt.err (!%p1812_p3)
}
  0x60   : > { %s1816_s24 = scalar_lea.vmem %s313_s16, 1024  ;;  %p1824_p12 = scmp.lt.s32.totalorder %s313_s16, %s313_s16 }
  0x61   : > { %p1817_p5 = scmp.ne.s32.totalorder %s313_s16, %s1816_s24  ;;  %p1825_p0 = scmp.lt.s32.totalorder %s1816_s24, %s1816_s24 }
  0x63   : > { %p1819_p7 = pnand %p1817_p5, %p2068_p13  ;;  %p1826_p1 = por %p1825_p0, %p1824_p12 }
  0x65   : > { %p1820_p9 = pneg %p1819_p7 }
  0x67   : > { %p1827_p2 = pnand %p1826_p1, %p1820_p9 }
  0x69   : > { %1830 = shalt.err (!%p1827_p2)
}
  0x6a   : > { %1588 = dma.hbm_to_vmem [thread:$0]  (!%p2052_p11), %s2339_s7, 1024, %s313_s16, [#allocation10], %s1940_s25, %s1940_s25, %s1941_s26  }
  0x6b   : > { %s2162_s14 = sadd.s32 1, %s1935_s12   ;;  %s34_s20 = sadd.s32 1, %s1931_s11 }
  0x6c   : > { %s31_s30 = ssub.s32 %s1935_s12, %s2162_s14  ;;  %p41_p13 = scmp.ne.s32.totalorder %s1931_s11, %s1927_s10 }
  0x6d   : > { %p32_p4 = scmp.eq.s32.totalorder %s31_s30, 0  ;;  %p42_p8 = scmp.eq.s32.totalorder %s1935_s12, 0 }
  0x6e   : > { %p2356_p6 = scmp.eq.s32.totalorder %s2022_s13, 1  ;;  %p1601_p3 = scmp.lt.s32.totalorder %s1935_s12, 2 }
  0x6f   : > { %s2178_s28 = scalar_select %p32_p4, %s1931_s11, %s34_s20  }
  0x70   : > { %p2172_p10 = por %p2356_p6, %p41_p13  ;;  %p43_p5 = por %p42_p8, %p41_p13 }
  0x71   : > { %s329_s29 = sand.u32 1, %s1931_s11   ;;  %s1431_s25 = sshll.u32 %s1935_s12, 10 }
  0x72   : > { %s1342_s18 = sshll.u32 %s329_s29, 6  ;;  %s2185_s21 = scalar_lea.hbm %s2332_s0, %s1431_s25 }
  0x73   : > { %s333_s23 = scalar_lea.vmem [#allocation3], %s1342_s18  ;;  %p2189_p11 = pnand %p1601_p3, %p43_p5 }
  0x74   : > { %s341_s19 = sshll.u32 %s333_s23, 4  ;;  %s2193_s22 = scalar_lea.sflag [#allocation4], %s329_s29  ;;  %s2187_s19 = int_to_ptr.vmem [resolvable:$true] %s341_s19 }
  0x75   : > { %s1831_s9 = scalar_lea.hbm %s2185_s21, 1024  ;;  %p1833_p9 = pneg %p2189_p11 }
  0x76   : > { %p1832_p7 = scmp.ne.s32.totalorder %s2185_s21, %s1831_s9  ;;  %s1836_s18 = scalar_lea.hbm %s2332_s0, 2048 }
  0x77   : > { %p1837_p1 = scmp.lt.u32.totalorder %s2185_s21, %s2332_s0  ;;  %p1838_p2 = scmp.lt.u32.totalorder %s1836_s18, %s1831_s9 }
  0x78   : > { %p1834_p12 = pnand %p1833_p9, %p1832_p7  ;;  %p1840_p4 = scmp.lt.u32.totalorder %s1831_s9, %s2185_s21 }
  0x79   : > { %p1839_p13 = por %p1838_p2, %p1837_p1 }
  0x7a   : > { %p1835_p0 = pneg %p1834_p12 }
  0x7b   : > { %p1841_p8 = por %p1840_p4, %p1839_p13 }
  0x7d   : > { %p1842_p6 = pnand %p1841_p8, %p1835_p0 }
  0x7f   : > { %1845 = shalt.err (!%p1842_p6)
}
  0x80   : > { %s1846_s29 = scalar_lea.vmem %s2187_s19, 1024  ;;  %s1943_s16 = smov [#allocation3]  }
  0x81   : > { %p1847_p3 = scmp.ne.s32.totalorder %s2187_s19, %s1846_s29  ;;  %s1851_s23 = sshll.u32 %s1943_s16, 4  ;;  %s1852_s23 = int_to_ptr.vmem [resolvable:$false] %s1851_s23 }
  0x82   : > { %s1853_s20 = scalar_lea.vmem %s1852_s23, 2048  ;;  %p1854_p12 = scmp.lt.s32.totalorder %s2187_s19, %s1852_s23 }
  0x83   : > { %p1849_p5 = pnand %p1847_p3, %p1833_p9  ;;  %p1855_p1 = scmp.lt.s32.totalorder %s1853_s20, %s1846_s29 }
  0x85   : > { %p1850_p7 = pneg %p1849_p5  ;;  %p1856_p2 = por %p1855_p1, %p1854_p12 }
  0x87   : > { %p1857_p13 = pnand %p1856_p2, %p1850_p7 }
  0x89   : > { %1860 = shalt.err (!%p1857_p13)
}
  0x8a   : > { %s1944_s9 = smov 128   ;;  %s1945_s30 = smov 8  }
  0x8b   : > { %1592 = dma.hbm_to_vmem [thread:$0]  (!%p2189_p11), %s2185_s21, 1024, %s2187_s19, %s2193_s22, %s1944_s9, %s1944_s9, %s1945_s30  }
  0x8c   : > { %p2359_p9 = scmp.ne.s32.totalorder %s2353_s17, 0 }
  0x8d   : > { %s2224_s18 = sand.u32 (!%p2359_p9), 1, %s1927_s10   ;;  %p2360_p0 = scmp.ne.s32.totalorder (!%p2359_p9), %s2350_s15, 0 }
  0x8e   : > { %353 = sbr.rel (%p2359_p9) target bundleno = 1126 (0x466), region = 56  ;;  %s1347_s25 = sshll.u32 (!%p2359_p9), %s2224_s18, 6 }
  0x8f   : > { %s356_s26 = scalar_lea.sflag (!%p2359_p9), [#allocation4], %s2224_s18  ;;  %s2228_s29 = scalar_lea.vmem (!%p2359_p9), [#allocation3], %s1347_s25 }
  0x95   : > { %1906 = dma.done.wait (%p2360_p0), %s356_s26, 1024  }
  0x96   : > { %1908 = vsyncadd (%p2360_p0), %s356_s26, 4294966272  ;;  %p2361_p11 = scmp.eq.s32.totalorder %s2022_s13, 0 }
  0x98   : > { %1910 = dma.done.wait (%p2361_p11), [#allocation7], 4096   ;;  %p2362_p4 = pmov %p2361_p11 }
  0x9a   : > { %1912 = vsyncadd (%p2362_p4), [#allocation7], 4294963200  ;;  %p2363_p8 = pmov %p2362_p4 }
  0x9b   : > { %p2364_p6 = pmov %p2362_p4 }
  0x9c   : > { %1914 = dma.done.wait (%p2363_p8), [#allocation10], 3072  }
  0x9d   : > { %1916 = vsyncadd (%p2364_p6), [#allocation10], 4294964224  ;;  %v1651_v0 = vld [vmem:[#allocation6 + $0x40] sm:$0xff]   ;;  %v1653_v2 = vld [vmem:[#allocation6 + $0x48] sm:$0xff]   ;;  %s1352_s15 = sshll.u32 %s2224_s18, 7  ;;  %vm1947_vm0 = vmmov 0  }
  0x9e   : > { %v1652_v1 = vld [vmem:[#allocation6] sm:$0xff]   ;;  %1437 = vmatprep.subr.bf16.mxu0 %v1651_v0  ;;  %v1654_v3 = vld [vmem:[#allocation6 + $0x8] sm:$0xff]   ;;  %v1655_v4 = vld [vmem:[#allocation6 + $0x50] sm:$0xff]   ;;  %s2254_s19 = scalar_lea.vmem [#allocation12], %s1352_s15  ;;  %s1436_s30 = sshll.u32 %s2022_s13, 11 }
  0x9f   : > { %1438 = vmatpush3.bf16.msra.mxu0 %v1652_v1  ;;  %v1656_v5 = vld [vmem:[#allocation6 + $0x10] sm:$0xff]   ;;  %v1657_v6 = vld [vmem:[#allocation6 + $0x58] sm:$0xff]   ;;  %v1659_v8 = vld [vmem:[#allocation6 + $0x60] sm:$0xff]   ;;  %s1224_s25 = sshll.u32 %s2254_s19, 4  ;;  %s2365_s15 = sld [smem:[#allocation19_spill]]  ;;  %s2286_s25 = int_to_ptr.vmem [resolvable:$true] %s1224_s25 }
  0xa0   : > { %1439 = vmatprep.subr.bf16.mxu0 %v1653_v2  ;;  %v1658_v7 = vld [vmem:[#allocation6 + $0x18] sm:$0xff]   ;;  %v1660_v9 = vld [vmem:[#allocation6 + $0x20] sm:$0xff]   ;;  %v1661_v10 = vld [vmem:[#allocation6 + $0x68] sm:$0xff]   ;;  %s1210_s13 = scalar_lea.sflag [#allocation5], %s2224_s18  ;;  %s1861_s21 = scalar_lea.vmem %s2286_s25, 2048 }
  0xa1   : > { %v1669_v11 = vld [vmem:[%s2228_s29 + $0x4] ss:$8 sps:$4 sm:$0xff]   ;;  %v1663_v13 = vld [vmem:[#allocation6 + $0x70] sm:$0xff]   ;;  %v1665_v15 = vld [vmem:[#allocation6 + $0x78] sm:$0xff]   ;;  %p1862_p3 = scmp.ne.s32.totalorder %s2286_s25, %s1861_s21  ;;  %s1948_s24 = smov [#allocation12]  }
  0xa2   : > { %v1662_v12 = vld [vmem:[#allocation6 + $0x28] sm:$0xff]   ;;  %628 = vmatprep.mubr.bf16.mxu0 %v1669_v11  ;;  %v1664_v14 = vld [vmem:[#allocation6 + $0x30] sm:$0xff]   ;;  %v1679_v16 = vld [vmem:[#allocation8 + $0x40] sm:$0xff]   ;;  %s1865_s22 = sshll.u32 %s1948_s24, 4  ;;  %s1866_s22 = int_to_ptr.vmem [resolvable:$false] %s1865_s22 }
  0xa3   : > { %1440 = vmatpush3.bf16.msra.mxu0 %v1654_v3  ;;  %v1680_v17 = vld [vmem:[#allocation8] sm:$0xff]   ;;  %1477 = vmatprep.subr.bf16.mxu1 %v1679_v16  ;;  %v1681_v18 = vld [vmem:[#allocation8 + $0x48] sm:$0xff]   ;;  %v1666_v19 = vld [vmem:[#allocation6 + $0x38] sm:$0xff]   ;;  %p1863_p5 = pnand %p1862_p3, %p2172_p10  ;;  %s1867_s16 = scalar_lea.vmem %s1866_s22, 4096 }
  0xa4   : > { %1441 = vmatprep.subr.bf16.mxu0 %v1655_v4  ;;  %1478 = vmatpush3.bf16.msra.mxu1 %v1680_v17  ;;  %v1667_v20 = vld [vmem:[%s2228_s29] ss:$8 sps:$4 sm:$0xff]   ;;  %v1670_v21 = vld [vmem:[%s2228_s29 + $0x14] ss:$8 sps:$4 sm:$0xff]   ;;  %v1672_v22 = vld [vmem:[%s2228_s29 + $0x10] ss:$8 sps:$4 sm:$0xff]   ;;  %p1868_p12 = scmp.lt.s32.totalorder %s2286_s25, %s1866_s22  ;;  %p1869_p1 = scmp.lt.s32.totalorder %s1867_s16, %s1861_s21 }
  0xa5   : > { %1479 = vmatprep.subr.bf16.mxu1 %v1681_v18  ;;  %v1673_v23 = vld [vmem:[%s2228_s29 + $0x24] ss:$8 sps:$4 sm:$0xff]   ;;  %v1675_v24 = vld [vmem:[%s2228_s29 + $0x20] ss:$8 sps:$4 sm:$0xff]   ;;  %v1676_v25 = vld [vmem:[%s2228_s29 + $0x34] ss:$8 sps:$4 sm:$0xff]   ;;  %s2284_s17 = scalar_lea.hbm %s2365_s15, %s1436_s30  ;;  %p1864_p7 = pneg %p1863_p5 }
  0xa6   : > { %v1678_v26 = vld [vmem:[%s2228_s29 + $0x30] ss:$8 sps:$4 sm:$0xff]   ;;  %v1682_v27 = vld [vmem:[#allocation8 + $0x8] sm:$0xff]   ;;  %v1687_v32 = vld [vmem:[#allocation8 + $0x60] sm:$0xff]   ;;  %p1870_p2 = por %p1869_p1, %p1868_p12 }
  0xa7   : > { %1442 = vmatpush3.bf16.msra.mxu0 %v1656_v5  ;;  %v1683_v28 = vld [vmem:[#allocation8 + $0x50] sm:$0xff]   ;;  %v1685_v30 = vld [vmem:[#allocation8 + $0x58] sm:$0xff]   ;;  %v1688_v33 = vld [vmem:[#allocation8 + $0x20] sm:$0xff]  }
  0xa8   : > { %1443 = vmatprep.subr.bf16.mxu0 %v1657_v6  ;;  %1480 = vmatpush3.bf16.msra.mxu1 %v1682_v27  ;;  %v1684_v29 = vld [vmem:[#allocation8 + $0x10] sm:$0xff]   ;;  %v1686_v31 = vld [vmem:[#allocation8 + $0x18] sm:$0xff]   ;;  %v1689_v34 = vld [vmem:[#allocation8 + $0x68] sm:$0xff]   ;;  %p1871_p13 = pnand %p1870_p2, %p1864_p7 }
  0xa9   : > { %1481 = vmatprep.subr.bf16.mxu1 %v1683_v28  ;;  %v1690_v35 = vld [vmem:[#allocation8 + $0x28] sm:$0xff]   ;;  %v1691_v36 = vld [vmem:[#allocation8 + $0x70] sm:$0xff]   ;;  %v1693_v38 = vld [vmem:[#allocation8 + $0x78] sm:$0xff]  }
  0xaa   : > { %v1692_v37 = vld [vmem:[#allocation8 + $0x30] sm:$0xff]   ;;  %v1694_v39 = vld [vmem:[#allocation8 + $0x38] sm:$0xff]   ;;  %v1353_v41 = vld [vmem:[%s2334_s2] ss:$0 sm:$0xff] }
  0xab   : > { %1444 = vmatpush3.bf16.msra.mxu0 %v1658_v7  ;;  %v1701_v27 = vld [vmem:[#allocation9 + $0x58] sm:$0xff]  }
  0xac   : > { %1445 = vmatprep.subr.bf16.mxu0 %v1659_v8  ;;  %1482 = vmatpush3.bf16.msra.mxu1 %v1684_v29  ;;  %v1702_v28 = vld [vmem:[#allocation9 + $0x18] sm:$0xff]   ;;  %v1703_v29 = vld [vmem:[#allocation9 + $0x60] sm:$0xff]  }
  0xad   : > { %1483 = vmatprep.subr.bf16.mxu1 %v1685_v30  ;;  %v1704_v30 = vld [vmem:[#allocation9 + $0x20] sm:$0xff]  }
  0xaf   : > { %1446 = vmatpush3.bf16.msra.mxu0 %v1660_v9 }
  0xb0   : > { %1447 = vmatprep.subr.bf16.mxu0 %v1661_v10  ;;  %1484 = vmatpush3.bf16.msra.mxu1 %v1686_v31  ;;  %v1705_v31 = vld [vmem:[#allocation9 + $0x68] sm:$0xff]  }
  0xb1   : > { %1485 = vmatprep.subr.bf16.mxu1 %v1687_v32  ;;  %v1706_v32 = vld [vmem:[#allocation9 + $0x28] sm:$0xff]  }
  0xb3   : > { %1448 = vmatpush3.bf16.msra.mxu0 %v1662_v12 }
  0xb4   : > { %1449 = vmatprep.subr.bf16.mxu0 %v1663_v13  ;;  %1486 = vmatpush3.bf16.msra.mxu1 %v1688_v33  ;;  %v1707_v33 = vld [vmem:[#allocation9 + $0x70] sm:$0xff]  }
  0xb5   : > { %1487 = vmatprep.subr.bf16.mxu1 %v1689_v34  ;;  %v1708_v34 = vld [vmem:[#allocation9 + $0x30] sm:$0xff]  }
  0xb7   : > { %1450 = vmatpush3.bf16.msra.mxu0 %v1664_v14 }
  0xb8   : > { %1451 = vmatprep.subr.bf16.mxu0 %v1665_v15  ;;  %1488 = vmatpush3.bf16.msra.mxu1 %v1690_v35  ;;  %v1709_v35 = vld [vmem:[#allocation9 + $0x78] sm:$0xff]  }
  0xb9   : > { %1489 = vmatprep.subr.bf16.mxu1 %v1691_v36  ;;  %v1710_v36 = vld [vmem:[#allocation9 + $0x38] sm:$0xff]  }
  0xbb   : > { %1452 = vmatpush3.bf16.msra.mxu0 %v1666_v19 }
  0xbc   : > { %1490 = vmatpush3.bf16.msra.mxu1 %v1692_v37  ;;  %v1711_v37 = vld [vmem:[#allocation11] sm:$0xff]  }
  0xbd   : > { %1491 = vmatprep.subr.bf16.mxu1 %v1693_v38  ;;  %v1946_v38 = vmov 0.0  }
  0xbe   : > { %629 = vmatmul.mubr.bf16.vlgmr.msra.gmra.mrb[0].mxu0 %v1667_v20 }
  0xbf   : > { %636 = vmatprep.mubr.bf16.mxu0 %v1670_v21  ;;  %v1695_v21 = vld [vmem:[#allocation9 + $0x40] sm:$0xff]  }
  0xc0   : > { %1492 = vmatpush3.bf16.msra.mxu1 %v1694_v39  ;;  %1505 = vmatprep.subr.bf16.mxu0 %v1695_v21  ;;  %v1712_v39 = vld [vmem:[#allocation11 + $0x8] sm:$0xff]  }
  0xc1   : > { %1536 = vmatprep.subr.bf16.mxu1 %v1946_v38 }
  0xc6   : > { %637 = vmatmul.mubr.bf16.gmra.mrb[4].mxu0 %v1672_v22  ;;  %v1696_v22 = vld [vmem:[#allocation9] sm:$0xff]  }
  0xc7   : > { %644 = vmatprep.mubr.bf16.mxu0 %v1673_v23  ;;  %1506 = vmatpush3.bf16.msra.mxu0 %v1696_v22  ;;  %v1697_v23 = vld [vmem:[#allocation9 + $0x48] sm:$0xff]  }
  0xc8   : > { %1507 = vmatprep.subr.bf16.mxu0 %v1697_v23 }
  0xce   : > { %645 = vmatmul.mubr.bf16.gmra.mrb[8].mxu0 %v1675_v24  ;;  %v1698_v24 = vld [vmem:[#allocation9 + $0x8] sm:$0xff]  }
  0xcf   : > { %652 = vmatprep.mubr.bf16.mxu0 %v1676_v25  ;;  %1508 = vmatpush3.bf16.msra.mxu0 %v1698_v24  ;;  %v1699_v25 = vld [vmem:[#allocation9 + $0x50] sm:$0xff]  }
  0xd0   : > { %1509 = vmatprep.subr.bf16.mxu0 %v1699_v25 }
  0xd6   : > { %653 = vmatmul.mubr.bf16.gmra.mrb[12].mxu0 %v1678_v26  ;;  %v1700_v26 = vld [vmem:[#allocation9 + $0x10] sm:$0xff]  }
  0xd7   : > { %1510 = vmatpush3.bf16.msra.mxu0 %v1700_v26 }
  0xd8   : > { %1511 = vmatprep.subr.bf16.mxu0 %v1701_v27 }
  0xdb   : > { %1512 = vmatpush3.bf16.msra.mxu0 %v1702_v28 }
  0xdc   : > { %1513 = vmatprep.subr.bf16.mxu0 %v1703_v29 }
  0xdf   : > { %1514 = vmatpush3.bf16.msra.mxu0 %v1704_v30 }
  0xe0   : > { %1515 = vmatprep.subr.bf16.mxu0 %v1705_v31 }
  0xe3   : > { %1516 = vmatpush3.bf16.msra.mxu0 %v1706_v32 }
  0xe4   : > { %1517 = vmatprep.subr.bf16.mxu0 %v1707_v33 }
  0xe7   : > { %1518 = vmatpush3.bf16.msra.mxu0 %v1708_v34 }
  0xe8   : > { %1519 = vmatprep.subr.bf16.mxu0 %v1709_v35 }
  0xeb   : > { %1520 = vmatpush3.bf16.msra.mxu0 %v1710_v36 }
 0x191   : > { %v1453_v40 = vpop.f32.mrb[0].mxu0 }
 0x192   : > { %v1454_v42 = vpop.f32.mrb[1].mxu0 }
 0x193   : > { %v1455_v43 = vadd.f32 %v1454_v42, %v1453_v40  ;;  %v1456_v44 = vpop.f32.mrb[2].mxu0  ;;  %v1713_v40 = vld [vmem:[#allocation11 + $0x10] sm:$0xff]   ;;  %v1715_v42 = vld [vmem:[#allocation11 + $0x20] sm:$0xff]  }
 0x194   : > { %v1457_v45 = vpop.f32.mrb[3].mxu0 }
 0x195   : > { %v631_v46 = vadd.f32 %v1455_v43, %v1353_v41  ;;  %v1458_v47 = vadd.f32 %v1457_v45, %v1456_v44  ;;  %v1716_v43 = vld [vmem:[#allocation11 + $0x28] sm:$0xff]   ;;  %v1378_v45 = vld [vmem:[%s2336_s4] ss:$0 sm:$0xff] }
 0x197   : > { %661 = vst [vmem:[%s2254_s19] sm:$0xff] %v631_v46  ;;  %669 = vst [vmem:[#allocation2] sm:$0xff] %v631_v46  ;;  %v634_v48 = vadd.f32 %v1458_v47, %v1353_v41 }
 0x199   : > { %662 = vst [vmem:[%s2254_s19 + $0x8] sm:$0xff] %v634_v48  ;;  %670 = vst [vmem:[#allocation2 + $0x8] sm:$0xff] %v634_v48  ;;  %v1459_v49 = vpop.f32.mrb[4].mxu0 }
 0x19a   : > { %v1460_v50 = vpop.f32.mrb[5].mxu0 }
 0x19b   : > { %v1461_v51 = vadd.f32 %v1460_v50, %v1459_v49  ;;  %v1462_v52 = vpop.f32.mrb[6].mxu0 }
 0x19c   : > { %v1463_v53 = vpop.f32.mrb[7].mxu0 }
 0x19d   : > { %v639_v54 = vadd.f32 %v1461_v51, %v1353_v41  ;;  %v1464_v55 = vadd.f32 %v1463_v53, %v1462_v52 }
 0x19f   : > { %663 = vst [vmem:[%s2254_s19 + $0x10] sm:$0xff] %v639_v54  ;;  %671 = vst [vmem:[#allocation2 + $0x10] sm:$0xff] %v639_v54  ;;  %v642_v56 = vadd.f32 %v1464_v55, %v1353_v41 }
 0x1a0   : > { %v685_v1 = vld [vmem:[#allocation2 + $0x1] ss:$2 sm:$0xff]  ;;  %v677_v3 = vld [vmem:[#allocation2] ss:$2 sm:$0xff] }
 0x1a1   : > { %664 = vst [vmem:[%s2254_s19 + $0x18] sm:$0xff] %v642_v56  ;;  %672 = vst [vmem:[#allocation2 + $0x18] sm:$0xff] %v642_v56  ;;  %v1465_v57 = vpop.f32.mrb[8].mxu0 }
 0x1a2   : > { %v1466_v58 = vpop.f32.mrb[9].mxu0 }
 0x1a3   : > { %v1467_v59 = vadd.f32 %v1466_v58, %v1465_v57  ;;  %v1468_v60 = vpop.f32.mrb[10].mxu0 }
 0x1a4   : > { %v1469_v61 = vpop.f32.mrb[11].mxu0 }
 0x1a5   : > { %v647_v62 = vadd.f32 %v1467_v59, %v1353_v41  ;;  %v1470_v63 = vadd.f32 %v1469_v61, %v1468_v60 }
 0x1a7   : > { %665 = vst [vmem:[%s2254_s19 + $0x40] sm:$0xff] %v647_v62  ;;  %673 = vst [vmem:[#allocation2 + $0x20] sm:$0xff] %v647_v62  ;;  %v650_v0 = vadd.f32 %v1470_v63, %v1353_v41 }
 0x1a8   : > { %v687_v2 = vld [vmem:[#allocation2 + $0x11] ss:$2 sm:$0xff]  ;;  %v679_v4 = vld [vmem:[#allocation2 + $0x10] ss:$2 sm:$0xff] }
 0x1a9   : > { %666 = vst [vmem:[%s2254_s19 + $0x48] sm:$0xff] %v650_v0  ;;  %674 = vst [vmem:[#allocation2 + $0x28] sm:$0xff] %v650_v0  ;;  %v1471_v5 = vpop.f32.mrb[12].mxu0  ;;  %v693_v6 = vpack.c.bf16 %v687_v2, %v685_v1  ;;  %v692_v7 = vpack.c.bf16 %v679_v4, %v677_v3  ;;  %v1717_v3 = vld [vmem:[#allocation11 + $0x30] sm:$0xff]   ;;  %v1718_v4 = vld [vmem:[#allocation11 + $0x38] sm:$0xff]  }
 0x1aa   : > { %v1472_v8 = vpop.f32.mrb[13].mxu0 }
 0x1ab   : > { %v1473_v9 = vadd.f32 %v1472_v8, %v1471_v5  ;;  %v1474_v10 = vpop.f32.mrb[14].mxu0  ;;  %863 = vmatprep.mubr.bf16.mxu1 %v693_v6  ;;  %v1395_v6 = vld [vmem:[%s2338_s6] ss:$0 sm:$0xff] }
 0x1ac   : > { %v1475_v11 = vpop.f32.mrb[15].mxu0  ;;  %864 = vmatmul.mubr.bf16.vlgmr.msra.gmra.mrb[0].mxu1 %v692_v7 }
 0x1ad   : > { %v655_v12 = vadd.f32 %v1473_v9, %v1353_v41  ;;  %v1476_v13 = vadd.f32 %v1475_v11, %v1474_v10  ;;  %1537 = vmatpush3.bf16.msra.mxu1 %v1711_v37 }
 0x1ae   : > { %1538 = vmatprep.subr.bf16.mxu1 %v1946_v38 }
 0x1af   : > { %667 = vst [vmem:[%s2254_s19 + $0x50] sm:$0xff] %v655_v12  ;;  %675 = vst [vmem:[#allocation2 + $0x30] sm:$0xff] %v655_v12  ;;  %v658_v14 = vadd.f32 %v1476_v13, %v1353_v41  ;;  %v1714_v41 = vld [vmem:[#allocation11 + $0x18] sm:$0xff]  }
 0x1b0   : > { %v689_v15 = vld [vmem:[#allocation2 + $0x21] ss:$2 sm:$0xff]  ;;  %v681_v17 = vld [vmem:[#allocation2 + $0x20] ss:$2 sm:$0xff] }
 0x1b1   : > { %668 = vst [vmem:[%s2254_s19 + $0x58] sm:$0xff] %v658_v14  ;;  %676 = vst [vmem:[#allocation2 + $0x38] sm:$0xff] %v658_v14  ;;  %1539 = vmatpush3.bf16.msra.mxu1 %v1712_v39 }
 0x1b2   : > { %1540 = vmatprep.subr.bf16.mxu1 %v1946_v38 }
 0x1b5   : > { %1541 = vmatpush3.bf16.msra.mxu1 %v1713_v40 }
 0x1b6   : > { %1542 = vmatprep.subr.bf16.mxu1 %v1946_v38 }
 0x1b8   : > { %v691_v16 = vld [vmem:[#allocation2 + $0x31] ss:$2 sm:$0xff]  ;;  %v683_v18 = vld [vmem:[#allocation2 + $0x30] ss:$2 sm:$0xff] }
 0x1b9   : > { %v695_v19 = vpack.c.bf16 %v691_v16, %v689_v15  ;;  %v694_v20 = vpack.c.bf16 %v683_v18, %v681_v17  ;;  %1543 = vmatpush3.bf16.msra.mxu1 %v1714_v41  ;;  %v1414_v15 = vld [vmem:[%s2340_s8] ss:$0 sm:$0xff] }
 0x1ba   : > { %1544 = vmatprep.subr.bf16.mxu1 %v1946_v38 }
 0x1bb   : > { %871 = vmatprep.mubr.bf16.mxu1 %v695_v19 }
 0x1bc   : > { %872 = vmatmul.mubr.bf16.gmra.mrb[4].mxu1 %v694_v20 }
 0x1bd   : > { %1545 = vmatpush3.bf16.msra.mxu1 %v1715_v42  ;;  %1552 = vmatprep.mubr.msk.bf16.mxu1 %vm1947_vm0, %v1946_v38 }
 0x1be   : > { %1546 = vmatprep.subr.bf16.mxu1 %v1946_v38 }
 0x1c1   : > { %1547 = vmatpush3.bf16.msra.mxu1 %v1716_v43 }
 0x1c2   : > { %1548 = vmatprep.subr.bf16.mxu1 %v1946_v38 }
 0x1c5   : > { %1549 = vmatpush3.bf16.msra.mxu1 %v1717_v3 }
 0x1c6   : > { %1550 = vmatprep.subr.bf16.mxu1 %v1946_v38 }
 0x1c9   : > { %1551 = vmatpush3.bf16.msra.mxu1 %v1718_v4 }
 0x27f   : > { %v1493_v44 = vpop.f32.mrb[0].mxu1 }
 0x280   : > { %v1494_v46 = vpop.f32.mrb[1].mxu1 }
 0x281   : > { %v1495_v47 = vadd.f32 %v1494_v46, %v1493_v44  ;;  %v1496_v48 = vpop.f32.mrb[2].mxu1 }
 0x282   : > { %v1497_v49 = vpop.f32.mrb[3].mxu1 }
 0x283   : > { %v866_v50 = vadd.f32 %v1495_v47, %v1378_v45  ;;  %v1498_v51 = vadd.f32 %v1497_v49, %v1496_v48 }
 0x285   : > { %880 = vst [vmem:[%s2254_s19 + $0x20] sm:$0xff] %v866_v50  ;;  %884 = vst [vmem:[#allocation2] sm:$0xff] %v866_v50  ;;  %v869_v52 = vadd.f32 %v1498_v51, %v1378_v45 }
 0x287   : > { %881 = vst [vmem:[%s2254_s19 + $0x28] sm:$0xff] %v869_v52  ;;  %885 = vst [vmem:[#allocation2 + $0x8] sm:$0xff] %v869_v52 }
 0x28e   : > { %v891_v61 = vld [vmem:[#allocation2 + $0x1] ss:$2 sm:$0xff]  ;;  %v888_v63 = vld [vmem:[#allocation2] ss:$2 sm:$0xff] }
 0x28f   : > { %v1499_v53 = vpop.f32.mrb[4].mxu1 }
 0x290   : > { %v1500_v54 = vpop.f32.mrb[5].mxu1 }
 0x291   : > { %v1501_v55 = vadd.f32 %v1500_v54, %v1499_v53  ;;  %v1502_v56 = vpop.f32.mrb[6].mxu1 }
 0x292   : > { %v1503_v57 = vpop.f32.mrb[7].mxu1 }
 0x293   : > { %v874_v58 = vadd.f32 %v1501_v55, %v1378_v45  ;;  %v1504_v59 = vadd.f32 %v1503_v57, %v1502_v56 }
 0x295   : > { %882 = vst [vmem:[%s2254_s19 + $0x60] sm:$0xff] %v874_v58  ;;  %886 = vst [vmem:[#allocation2 + $0x20] sm:$0xff] %v874_v58  ;;  %v877_v60 = vadd.f32 %v1504_v59, %v1378_v45 }
 0x297   : > { %883 = vst [vmem:[%s2254_s19 + $0x68] sm:$0xff] %v877_v60  ;;  %887 = vst [vmem:[#allocation2 + $0x28] sm:$0xff] %v877_v60 }
 0x29e   : > { %v892_v62 = vld [vmem:[#allocation2 + $0x21] ss:$2 sm:$0xff]  ;;  %v890_v0 = vld [vmem:[#allocation2 + $0x20] ss:$2 sm:$0xff] }
 0x29f   : > { %v1433_v1 = vpack.c.bf16 %v892_v62, %v891_v61  ;;  %v1432_v2 = vpack.c.bf16 %v890_v0, %v888_v63 }
 0x2a1   : > { %1076 = vmatprep.mubr.bf16.mxu0 %v1433_v1 }
 0x2a2   : > { %1077 = vmatmul.mubr.bf16.vlgmr.msra.gmra.mrb[16].mxu0 %v1432_v2 }
 0x375   : > { %v1521_v5 = vpop.f32.mrb[16].mxu0 }
 0x376   : > { %v1522_v7 = vpop.f32.mrb[17].mxu0 }
 0x377   : > { %v1523_v8 = vadd.f32 %v1522_v7, %v1521_v5  ;;  %v1524_v9 = vpop.f32.mrb[18].mxu0 }
 0x378   : > { %v1525_v10 = vpop.f32.mrb[19].mxu0 }
 0x379   : > { %v1079_v11 = vadd.f32 %v1523_v8, %v1395_v6  ;;  %v1526_v12 = vadd.f32 %v1525_v10, %v1524_v9 }
 0x37b   : > { %1085 = vst [vmem:[%s2254_s19 + $0x30] sm:$0xff] %v1079_v11  ;;  %v1082_v13 = vadd.f32 %v1526_v12, %v1395_v6 }
 0x37d   : > { %1086 = vst [vmem:[%s2254_s19 + $0x70] sm:$0xff] %v1082_v13  ;;  %v1434_v14 = vpack.c.bf16 %v1082_v13, %v1079_v11 }
 0x37f   : > { %1553 = vmatmul.mubr.bf16.vlgmr.msra.gmra.mrb[8].mxu1 %v1434_v14 }
 0x452   : > { %v1200_v16 = vpop.f32.mrb[8].mxu1 }
 0x453   : > { %v1201_v17 = vadd.f32 %v1414_v15, %v1200_v16  ;;  %v1554_v18 = vpop.f32.mrb[9].mxu1 }
 0x454   : > { %v1203_v19 = vpop.f32.mrb[10].mxu1 }
 0x455   : > { %1207 = vst [vmem:[%s2254_s19 + $0x38] sm:$0xff] %v1201_v17  ;;  %v1204_v20 = vadd.f32 %v1414_v15, %v1203_v19  ;;  %v1555_v21 = vpop.f32.mrb[11].mxu1 }
 0x457   : > { %1208 = vst [vmem:[%s2254_s19 + $0x78] sm:$0xff] %v1204_v20 }
 0x458   : > { %1874 = shalt.err (!%p1871_p13)
}
 0x459   : > { %s1875_s19 = scalar_lea.hbm %s2284_s17, 2048  ;;  %s1879_s9 = scalar_lea.hbm %s2365_s15, 4096 }
 0x45a   : > { %p1876_p9 = scmp.ne.s32.totalorder %s2284_s17, %s1875_s19  ;;  %p1880_p4 = scmp.lt.u32.totalorder %s2284_s17, %s2365_s15 }
 0x45b   : > { %p1881_p8 = scmp.lt.u32.totalorder %s1879_s9, %s1875_s19  ;;  %p1883_p3 = scmp.lt.u32.totalorder %s1875_s19, %s2284_s17 }
 0x45c   : > { %p1877_p0 = pnand %p1876_p9, %p2172_p10 }
 0x45d   : > { %p1882_p6 = por %p1881_p8, %p1880_p4 }
 0x45e   : > { %p1878_p11 = pneg %p1877_p0 }
 0x45f   : > { %p1884_p5 = por %p1883_p3, %p1882_p6 }
 0x461   : > { %p1885_p7 = pnand %p1884_p5, %p1878_p11 }
 0x463   : > { %1888 = shalt.err (!%p1885_p7)
}
 0x464   : > { %s1949_s29 = smov 128   ;;  %s1950_s21 = smov 8  }
 0x465   : > { %1574 = dma.vmem_to_hbm [thread:$0]  (%p2172_p10), %s2286_s25, 2048, %s2284_s17, %s1210_s13, %s1949_s29, %s1949_s29, %s1950_s21  }
 0x466 PF: > { %s2366_s24 = sld [smem:[#allocation17_spill]]  ;;  %s2367_s22 = sld [smem:[#allocation18_spill]] }
 0x467   : > { %p2369_p1 = scmp.ge.s32.totalorder %s1935_s12, 2 }
 0x46c   : > { %s1239_s16 = sand.u32 1, %s2366_s24   ;;  %p2368_p12 = scmp.ne.s32.totalorder %s2367_s22, 0 }
 0x46d   : > { %s1240_s19 = scalar_lea.sflag [#allocation5], %s1239_s16 }
 0x46e   : > { %p1594_p2 = pnand %p2369_p1, %p2368_p12 }
 0x470   : > { %1918 = dma.done.wait (!%p1594_p2), %s1240_s19, 2048  }
 0x471   : > { %1920 = vsyncadd (!%p1594_p2), %s1240_s19, 4294965248  ;;  %p24_p13 = scmp.ge.s32.totalorder %s2162_s14, 4   ;;  %s2370_s30 = smov %s1927_s10 }
 0x472   : > { %s2371_s10 = smov %s1931_s11  ;;  %s2372_s11 = smov %s2178_s28 }
 0x473   : > { %s2373_s12 = smov %s2162_s14  ;;  %26 = sbr.rel (!%p24_p13) target bundleno = 9 (0x9), region = 125 }
 0x47a   :  { %1245 = vsyncpa [#allocation4], 1 }
 0x47b   :  { %1247 = vsyncpa [#allocation4 + $0x1], 1 }
 0x47c   :  { %1248 = vsyncpa [#allocation7], 1 }
 0x47d   :  { %1249 = vsyncpa [#allocation10], 1 }
 0x47e   :  { %1250 = vsyncpa [#allocation5], 1 }
 0x47f   :  { %1252 = vsyncpa [#allocation5 + $0x1], 1 }

</bundles_post_ra>
